<compile_context>
chip_gen: v7x
topology: tpu7x:2x2x1
jax: 0.10.0
libtpu: 0.0.40
codegen_flags: <defaults>
</compile_context>

<pallas_src>
import functools

import jax
import jax.numpy as jnp
from jax.experimental import pallas as pl
from jax.experimental.pallas import tpu as pltpu


_ACT_DTYPE = jnp.bfloat16     # activation / weight storage dtype (bf16 MXU path)
_TARGET_M = 2048              # target M (= ROW_TILE * W) per conv matmul
_FOLD_MAX_CIN = 128           # fold 3x3 taps into K when Cin <= 128
_KSLOT = 128                  # lane-aligned per-tap slot in the folded im2col
_POOL_BUDGET_BYTES = 2 * 1024 * 1024


# ----------------------------- small helpers --------------------------------

def _largest_divisor(n, cap):
    for d in range(min(n, cap), 0, -1):
        if n % d == 0:
            return d
    return 1


def _pick_conv_row_tile(h, w, target_m=_TARGET_M):
    """Rows per conv grid step: M = rows*W near target, divides H, 8-aligned."""
    cap = max(1, target_m // w)
    if cap >= h:
        return h
    for d in range(cap, 0, -1):
        if h % d == 0 and (d * w) % 8 == 0:
            return d
    return h


def _pick_rows_tile(rows, cap=_TARGET_M):
    """Row tile for flat (rows, C) kernels: multiple of 8 unless full."""
    if rows <= cap:
        return rows
    t = cap - cap % 8
    while t >= 8:
        if rows % t == 0:
            return t
        t -= 8
    return rows


@functools.lru_cache(maxsize=None)
def _vmem_limit_bytes():
    # v5e/v6e: 128 MiB VMEM per TensorCore, v7x only 64 MiB.
    try:
        capacity = pltpu.get_tpu_info().vmem_capacity_bytes
    except Exception:
        capacity = 64 * 1024 * 1024
    return int(min(capacity * 3 // 4, 96 * 1024 * 1024))


# ----------------------------- conv3x3 + ReLU -------------------------------

def _conv3x3_relu_kernel(x_ref, w_ref, b_ref, o_ref, xpad_ref, *col_scratch,
                         rt, width, cin, cout):
    """3x3 / pad=1 conv + bias + ReLU on RT output rows of one image.

    x_ref    : (H*W, Cin) bf16  whole flattened image (resident across the
                                row-tile axis -> fetched once per image).
    w_ref    : (9*KSLOT, Cout)  folded weights, or (3,3,Cin,Cout) for taps.
    b_ref    : (1, Cout) f32.
    o_ref    : (RT*W, Cout)     output rows, flattened.
    xpad_ref : ((RT+2)*W+2, Cin) bf16 scratch: row-padded flat tile.
    col_scratch (optional): (RT*W, 9*KSLOT) bf16 im2col scratch (fold path).
    """
    fold = bool(col_scratch)
    r = pl.program_id(1)
    last = pl.num_programs(1) - 1
    m = rt * width
    h0 = r * m
    if m % 8 == 0:
        h0 = pl.multiple_of(h0, 8)

    # Zero guards + top/bottom halo defaults (zero == Conv2d(padding=1)).
    xpad_ref[0:1 + width, :] = jnp.zeros((1 + width, cin), xpad_ref.dtype)
    xpad_ref[1 + (rt + 1) * width:(rt + 2) * width + 2, :] = (
        jnp.zeros((width + 1, cin), xpad_ref.dtype))

    # Body rows, then the halo rows that exist (not at the image borders).
    xpad_ref[1 + width:1 + width + m, :] = x_ref[pl.ds(h0, m), :]

    @pl.when(r > 0)
    def _():
        xpad_ref[1:1 + width, :] = x_ref[pl.ds(h0 - width, width), :]

    @pl.when(r < last)
    def _():
        xpad_ref[1 + (rt + 1) * width:1 + (rt + 2) * width, :] = (
            x_ref[pl.ds(h0 + m, width), :])

    # In the flattened layout a (dy, dx) tap is a contiguous slab at offset
    # dy*W + dx; the dx=0 / dx=2 taps wrap around row boundaries, which maps
    # exactly to the zero column padding -> mask those positions.
    col_idx = jax.lax.broadcasted_iota(jnp.int32, (m, 1), 0) % width
    not_first_col = col_idx != 0
    not_last_col = col_idx != (width - 1)

    def tap(dy, dx):
        s = xpad_ref[dy * width + dx:dy * width + dx + m, :]
        if dx == 0:
            s = jnp.where(not_first_col, s, jnp.zeros_like(s))
        elif dx == 2:
            s = jnp.where(not_last_col, s, jnp.zeros_like(s))
        return s

    if fold:
        # K-fold: one MXU matmul with K = 9*KSLOT instead of 9 matmuls.
        col_ref = col_scratch[0]
        if cin < _KSLOT:
            # Pad columns feed zero weight rows; zero them so garbage VMEM
            # (possibly NaN bit patterns) cannot leak through 0 * NaN.
            col_ref[...] = jnp.zeros(col_ref.shape, col_ref.dtype)
        for dy in range(3):
            for dx in range(3):
                off = (dy * 3 + dx) * _KSLOT
                col_ref[:, off:off + cin] = tap(dy, dx)
        acc = jnp.dot(col_ref[...], w_ref[...],
                      preferred_element_type=jnp.float32)
    else:
        # Uniform mask -> dot -> add chain (v7x MRB in-place accumulation).
        acc = jnp.zeros((m, cout), jnp.float32)
        for dy in range(3):
            for dx in range(3):
                acc = acc + jnp.dot(tap(dy, dx), w_ref[dy, dx],
                                    preferred_element_type=jnp.float32)

    o_ref[...] = jnp.maximum(acc + b_ref[...], 0.0).astype(o_ref.dtype)


@functools.lru_cache(maxsize=None)
def _make_conv(nb, h, w, cin, cout, rt, fold):
    m = rt * w
    kernel = functools.partial(_conv3x3_relu_kernel, rt=rt, width=w,
                               cin=cin, cout=cout)
    scratch = [pltpu.VMEM(((rt + 2) * w + 2, cin), _ACT_DTYPE)]
    if fold:
        scratch.append(pltpu.VMEM((m, 9 * _KSLOT), _ACT_DTYPE))
        w_spec = pl.BlockSpec((9 * _KSLOT, cout), lambda n, r: (0, 0))
    else:
        w_spec = pl.BlockSpec((3, 3, cin, cout), lambda n, r: (0, 0, 0, 0))
    # TODO(synk): on v7x, pltpu.CORE_PARALLEL on the batch axis would force
    # the two TensorCores to split images; plain "parallel" is kept here for
    # portability across v5e/v6e.
    return pl.pallas_call(
        kernel,
        out_shape=jax.ShapeDtypeStruct((nb, h * w, cout), _ACT_DTYPE),
        grid=(nb, h // rt),
        in_specs=[
            # Whole flattened image; constant across the row-tile axis so it
            # is DMA'd once per image and stays resident in VMEM (bf16 only).
            pl.BlockSpec((None, h * w, cin), lambda n, r: (n, 0, 0)),
            w_spec,
            pl.BlockSpec((1, cout), lambda n, r: (0, 0)),
        ],
        out_specs=pl.BlockSpec((None, m, cout), lambda n, r: (n, r, 0)),
        scratch_shapes=scratch,
        compiler_params=pltpu.CompilerParams(
            dimension_semantics=("parallel", "parallel"),
            vmem_limit_bytes=_vmem_limit_bytes()),
    )


def conv3x3_relu(x, w, b, fold):
    # x: (NB,H,W,Cin) bf16; w: folded (9*128,Cout) or (3,3,Cin,Cout) bf16.
    nb, h, wd, cin = x.shape
    cout = b.shape[-1]
    rt = _pick_conv_row_tile(h, wd)
    fn = _make_conv(nb, h, wd, cin, cout, rt, fold)
    out = fn(x.reshape(nb, h * wd, cin), w, b)
    return out.reshape(nb, h, wd, cout)


# ------------------- first conv (Cin=3): wrapper im2col + matmul ------------

def _matmul_bias_relu_kernel(x_ref, w_ref, b_ref, o_ref):
    acc = jnp.dot(x_ref[...], w_ref[...], preferred_element_type=jnp.float32)
    o_ref[...] = jnp.maximum(acc + b_ref[...], 0.0).astype(o_ref.dtype)


@functools.lru_cache(maxsize=None)
def _make_first(nb, rows, kin, cout, tr):
    return pl.pallas_call(
        _matmul_bias_relu_kernel,
        out_shape=jax.ShapeDtypeStruct((nb, rows, cout), _ACT_DTYPE),
        grid=(nb, rows // tr),
        in_specs=[pl.BlockSpec((None, tr, kin), lambda n, r: (n, r, 0)),
                  pl.BlockSpec((kin, cout), lambda n, r: (0, 0)),
                  pl.BlockSpec((1, cout), lambda n, r: (0, 0))],
        out_specs=pl.BlockSpec((None, tr, cout), lambda n, r: (n, r, 0)),
        compiler_params=pltpu.CompilerParams(
            dimension_semantics=("parallel", "parallel"),
            vmem_limit_bytes=_vmem_limit_bytes()),
    )


def _im2col3x3(x):
    # TODO(synk): plain-JAX glue (gather/concat); only used for the tiny
    # 3-channel first layer so the Pallas kernel avoids a lane-padded (HW,3)
    # resident image and runs one K=27 matmul instead of 9 K=3 matmuls.
    n, h, w, c = x.shape
    xp = jnp.pad(x, ((0, 0), (1, 1), (1, 1), (0, 0)))
    cols = [xp[:, dy:dy + h, dx:dx + w, :] for dy in range(3) for dx in range(3)]
    return jnp.concatenate(cols, axis=-1).reshape(n, h * w, 9 * c)


def first_conv3x3_relu(x, w, b):
    nb, h, wd, cin = x.shape
    cout = b.shape[-1]
    xcol = _im2col3x3(x)                       # (NB, H*W, 27) bf16
    rows = h * wd
    tr = _pick_rows_tile(rows)
    out = _make_first(nb, rows, 9 * cin, cout, tr)(xcol, w, b)
    return out.reshape(nb, h, wd, cout)


# ----------------------------- 2x2 max pool ---------------------------------

def _maxpool2_kernel(x_ref, o_ref, scr_ref):
    # x_ref: (PRT, 2, W, C) -- trailing dims are (W, C): no tile padding.
    w = x_ref.shape[2]
    scr_ref[...] = jnp.maximum(x_ref[:, 0, :, :], x_ref[:, 1, :, :])   # vertical
    even = scr_ref[:, pl.ds(0, w // 2, stride=2), :]                   # sublane-
    odd = scr_ref[:, pl.ds(1, w // 2, stride=2), :]                    # strided
    o_ref[...] = jnp.maximum(even, odd)                                # horizontal


@functools.lru_cache(maxsize=None)
def _make_pool(rows2, w, c, prt):
    return pl.pallas_call(
        _maxpool2_kernel,
        out_shape=jax.ShapeDtypeStruct((rows2, w // 2, c), _ACT_DTYPE),
        grid=(rows2 // prt,),
        in_specs=[pl.BlockSpec((prt, 2, w, c), lambda i: (i, 0, 0, 0))],
        out_specs=pl.BlockSpec((prt, w // 2, c), lambda i: (i, 0, 0)),
        scratch_shapes=[pltpu.VMEM((prt, w, c), _ACT_DTYPE)],
        compiler_params=pltpu.CompilerParams(
            dimension_semantics=("parallel",),
            vmem_limit_bytes=_vmem_limit_bytes()),
    )


def maxpool2x2(x):
    # TODO(synk): this could be fused into the previous conv's epilogue
    # (dual unpooled+pooled outputs) to skip one HBM read of the activation.
    n, h, w, c = x.shape
    rows2 = n * (h // 2)
    per_pair = 2 * w * c * jnp.dtype(_ACT_DTYPE).itemsize
    prt = _largest_divisor(rows2, max(1, _POOL_BUDGET_BYTES // per_pair))
    out = _make_pool(rows2, w, c, prt)(x.reshape(rows2, 2, w, c))
    return out.reshape(n, h // 2, w // 2, c)


# ----------------------------- L1 (mean |x - y|) ----------------------------

def _l1_sum_kernel(x_ref, y_ref, o_ref):
    @pl.when(pl.program_id(0) == 0)
    def _():
        o_ref[...] = jnp.zeros_like(o_ref)
    d = x_ref[...].astype(jnp.float32) - y_ref[...].astype(jnp.float32)
    o_ref[...] += jnp.sum(jnp.abs(d))


@functools.lru_cache(maxsize=None)
def _make_l1(rows_half, c, tr):
    nblk = rows_half // tr
    return pl.pallas_call(
        _l1_sum_kernel,
        out_shape=jax.ShapeDtypeStruct((1, 1), jnp.float32),
        grid=(nblk,),
        # Same array passed twice; the two index_maps read block i from batch
        # half 0 and batch half 1 -> no HBM slice copies of the activations.
        in_specs=[pl.BlockSpec((tr, c), lambda i: (i, 0)),
                  pl.BlockSpec((tr, c), lambda i: (i + nblk, 0))],
        out_specs=pl.BlockSpec((1, 1), lambda i: (0, 0)),
        compiler_params=pltpu.CompilerParams(
            dimension_semantics=("arbitrary",),
            vmem_limit_bytes=_vmem_limit_bytes()),
    )


def l1_mean_halves(xy):
    """mean |xy[:n] - xy[n:]| where the batch axis holds [input; target]."""
    c = xy.shape[-1]
    rows_half = xy.size // (2 * c)
    flat = xy.reshape(2 * rows_half, c)
    tr = _pick_rows_tile(rows_half)
    s = _make_l1(rows_half, c, tr)(flat, flat)
    return s[0, 0] / jnp.float32(rows_half * c)


# ----------------------------- gram matrix (style) --------------------------

def _gram_kernel(x_ref, o_ref):
    @pl.when(pl.program_id(1) == 0)
    def _():
        o_ref[...] = jnp.zeros_like(o_ref)
    a = x_ref[...]                                  # (TS, C)
    # TODO(synk): contracting dim 0 of both operands costs an XLU transpose per
    # step; fine while style_layers is unused by default.
    o_ref[...] += jax.lax.dot_general(
        a, a, (((0,), (0,)), ((), ())), preferred_element_type=jnp.float32)


@functools.lru_cache(maxsize=None)
def _make_gram(n2, s, c, ts):
    return pl.pallas_call(
        _gram_kernel,
        out_shape=jax.ShapeDtypeStruct((n2, c, c), jnp.float32),
        grid=(n2, s // ts),
        in_specs=[pl.BlockSpec((None, ts, c), lambda i, j: (i, j, 0))],
        out_specs=pl.BlockSpec((None, c, c), lambda i, j: (i, 0, 0)),
        compiler_params=pltpu.CompilerParams(
            dimension_semantics=("parallel", "arbitrary"),
            vmem_limit_bytes=_vmem_limit_bytes()),
    )


def gram(x):
    n2, h, w, c = x.shape
    s = h * w
    ts = _pick_rows_tile(s, 1024)
    return _make_gram(n2, s, c, ts)(x.reshape(n2, s, c))


# ----------------------------- glue -----------------------------------------

# TODO(synk): bilinear resize (F.interpolate, align_corners=False) stays in
# plain JAX -- pure gather + lerp glue, not the matmul hot path.
def _bilinear_resize_nhwc(x, out_h, out_w):
    n, h, w, c = x.shape

    def idx(out_size, in_size):
        i = jnp.arange(out_size, dtype=jnp.float32)
        src = (i + 0.5) * (in_size / out_size) - 0.5
        src = jnp.maximum(src, 0.0)
        i0 = jnp.minimum(jnp.floor(src).astype(jnp.int32), in_size - 1)
        i1 = jnp.minimum(i0 + 1, in_size - 1)
        frac = src - i0.astype(jnp.float32)
        return i0, i1, frac

    y0, y1, wy = idx(out_h, h)
    x0, x1, wx = idx(out_w, w)
    wy = wy[None, :, None, None]
    wx = wx[None, None, :, None]
    top = x[:, y0][:, :, x0] * (1 - wx) + x[:, y0][:, :, x1] * wx
    bot = x[:, y1][:, :, x0] * (1 - wx) + x[:, y1][:, :, x1] * wx
    return top * (1 - wy) + bot * wy


# ----------------------------- the module -----------------------------------

class VGGPerceptualLoss:
    # (pool_before_block, [(Cin, Cout), ...])
    #   == vgg16.features[:4], [4:9], [9:16], [16:23]
    _CFG = [
        (False, [(3, 64), (64, 64)]),
        (True,  [(64, 128), (128, 128)]),
        (True,  [(128, 256), (256, 256), (256, 256)]),
        (True,  [(256, 512), (512, 512), (512, 512)]),
    ]

    def __init__(self, resize=True, seed=42):
        self.resize = resize
        self.mean = jnp.array([0.485, 0.456, 0.406], jnp.float32)
        self.std = jnp.array([0.229, 0.224, 0.225], jnp.float32)
        key = jax.random.PRNGKey(seed)
        self.blocks = []
        first = True
        for pool, layers in self._CFG:
            convs = []
            for cin, cout in layers:
                key, kw, kb = jax.random.split(key, 3)
                # TODO(synk): pretrained torchvision VGG16 weights are not
                # available in-script; deterministic He-init keeps the same
                # structure and math.
                w = (jax.random.normal(kw, (3, 3, cin, cout), jnp.float32)
                     * jnp.sqrt(2.0 / (9 * cin)))
                b = (0.01 * jax.random.normal(kb, (cout,), jnp.float32)
                     ).reshape(1, cout)
                if first:
                    kind = "first"                       # wrapper-im2col matmul
                    wk = w.reshape(9 * cin, cout).astype(_ACT_DTYPE)
                    first = False
                elif cin <= _FOLD_MAX_CIN:
                    kind = "fold"                        # in-kernel K-fold
                    w9 = w.reshape(9, cin, cout)
                    if cin < _KSLOT:
                        w9 = jnp.pad(w9, ((0, 0), (0, _KSLOT - cin), (0, 0)))
                    wk = w9.reshape(9 * _KSLOT, cout).astype(_ACT_DTYPE)
                else:
                    kind = "taps"                        # 9-tap accumulate
                    wk = w.astype(_ACT_DTYPE)
                convs.append((kind, wk, b))
            self.blocks.append((pool, convs))

    def __call__(self, input, target, feature_layers=(0, 1, 2, 3),
                 style_layers=()):
        # input/target: NCHW float tensors, like the PyTorch module.
        x = jnp.transpose(jnp.asarray(input, jnp.float32), (0, 2, 3, 1))
        y = jnp.transpose(jnp.asarray(target, jnp.float32), (0, 2, 3, 1))
        if x.shape[-1] == 1:                            # grey -> RGB (repeat)
            x = jnp.repeat(x, 3, axis=-1)
            y = jnp.repeat(y, 3, axis=-1)
        # Run input & target through the trunk as ONE batch: every conv/pool
        # pallas_call (and its weight DMA) happens once instead of twice.
        xy = jnp.concatenate([x, y], axis=0)
        xy = (xy - self.mean) / self.std                # ImageNet normalize (f32)
        if self.resize:
            xy = _bilinear_resize_nhwc(xy, 224, 224)
        xy = xy.astype(_ACT_DTYPE)                      # bf16 into the trunk
        loss = jnp.float32(0.0)
        for i, (pool, convs) in enumerate(self.blocks):
            if pool:
                xy = maxpool2x2(xy)
            for kind, w, b in convs:
                if kind == "first":
                    xy = first_conv3x3_relu(xy, w, b)
                else:
                    xy = conv3x3_relu(xy, w, b, fold=(kind == "fold"))
            if i in feature_layers:
                loss = loss + l1_mean_halves(xy)
            if i in style_layers:
                loss = loss + l1_mean_halves(gram(xy))
        return loss


# ----------------------------- demo ------------------------------------------

if __name__ == "__main__":
    key = jax.random.PRNGKey(0)
    kx, ky = jax.random.split(key)
    inp = jax.random.uniform(kx, (2, 3, 16, 16), jnp.float32)
    tgt = jax.random.uniform(ky, (2, 3, 16, 16), jnp.float32)

    # resize=False keeps the demo at small spatial shapes (16 -> 8 -> 4 -> 2).
    model = VGGPerceptualLoss(resize=False)
    loss = jax.block_until_ready(model(inp, tgt))
    assert jnp.isfinite(loss), loss
    print("KERNEL_OK")
</pallas_src>

<mosaic_0001>
module attributes {stable_mosaic.version = 11 : i64} {
  func.func @_matmul_bias_relu_kernel(%arg0: i32, %arg1: i32, %arg2: memref<1x256x27xbf16, #tpu.memory_space<vmem>>, %arg3: memref<27x64xbf16, #tpu.memory_space<vmem>>, %arg4: memref<1x64xf32, #tpu.memory_space<vmem>>, %arg5: memref<1x256x64xbf16, #tpu.memory_space<vmem>>) attributes {dimension_semantics = [#tpu.dimension_semantics<parallel>, #tpu.dimension_semantics<parallel>], iteration_bounds = array<i64: 4, 1>, scalar_prefetch = 0 : i64, scratch_operands = 0 : i64, tpu.core_type = #tpu.core_type<tc>, window_params = [{transform_indices = @transform_0, window_bounds = array<i64: 1, 256, 27>}, {pipeline_mode = #tpu.pipeline_mode<synchronous>, transform_indices = @transform_1, window_bounds = array<i64: 27, 64>}, {pipeline_mode = #tpu.pipeline_mode<synchronous>, transform_indices = @transform_2, window_bounds = array<i64: 1, 64>}, {transform_indices = @transform_3, window_bounds = array<i64: 1, 256, 64>}]} {
    %c0 = arith.constant 0 : index
    %c0_0 = arith.constant 0 : index
    %c0_1 = arith.constant 0 : index
    %0 = vector.load %arg2[%c0, %c0_0, %c0_1] : memref<1x256x27xbf16, #tpu.memory_space<vmem>>, vector<1x256x27xbf16>
    %1 = vector.shape_cast %0 : vector<1x256x27xbf16> to vector<256x27xbf16>
    %c0_2 = arith.constant 0 : index
    %c0_3 = arith.constant 0 : index
    %2 = vector.load %arg3[%c0_2, %c0_3] : memref<27x64xbf16, #tpu.memory_space<vmem>>, vector<27x64xbf16>
    %cst = arith.constant dense<0.000000e+00> : vector<256x64xf32>
    %3 = tpu.matmul %1, %2, %cst {dimension_numbers = #tpu.dot_dimension_numbers<[1], [0], [0], [1], [0, 0, 1, 1], [], []>} : vector<256x27xbf16>, vector<27x64xbf16>, vector<256x64xf32> -> vector<256x64xf32>
    %c0_4 = arith.constant 0 : index
    %c0_5 = arith.constant 0 : index
    %4 = vector.load %arg4[%c0_4, %c0_5] : memref<1x64xf32, #tpu.memory_space<vmem>>, vector<1x64xf32>
    %5 = vector.broadcast %4 : vector<1x64xf32> to vector<256x64xf32>
    %6 = arith.addf %3, %5 : vector<256x64xf32>
    %cst_6 = arith.constant 0.000000e+00 : f32
    %7 = vector.broadcast %cst_6 : f32 to vector<256x64xf32>
    %8 = arith.maximumf %6, %7 : vector<256x64xf32>
    %9 = arith.truncf %8 : vector<256x64xf32> to vector<256x64xbf16>
    %c0_7 = arith.constant 0 : index
    %c0_8 = arith.constant 0 : index
    %c0_9 = arith.constant 0 : index
    %10 = vector.load %arg5[%c0_7, %c0_8, %c0_9] : memref<1x256x64xbf16, #tpu.memory_space<vmem>>, vector<1x256x64xbf16>
    %11 = vector.shape_cast %10 : vector<1x256x64xbf16> to vector<256x64xbf16>
    %12 = vector.shape_cast %9 : vector<256x64xbf16> to vector<1x256x64xbf16>
    tpu.vector_store %arg5[%c0_7, %c0_8, %c0_9], %12 {strides = array<i32>} : memref<1x256x64xbf16, #tpu.memory_space<vmem>>, vector<1x256x64xbf16>,
    return
  }
  func.func @transform_0(%arg0: i32, %arg1: i32) -> (i32, i32, i32) {
    %c0_i32 = arith.constant 0 : i32
    %c0_i32_0 = arith.constant 0 : i32
    return %arg0, %arg1, %c0_i32 : i32, i32, i32
  }
  func.func @transform_1(%arg0: i32, %arg1: i32) -> (i32, i32) {
    %c0_i32 = arith.constant 0 : i32
    %c0_i32_0 = arith.constant 0 : i32
    %c0_i32_1 = arith.constant 0 : i32
    return %c0_i32, %c0_i32_0 : i32, i32
  }
  func.func @transform_2(%arg0: i32, %arg1: i32) -> (i32, i32) {
    %c0_i32 = arith.constant 0 : i32
    %c0_i32_0 = arith.constant 0 : i32
    %c0_i32_1 = arith.constant 0 : i32
    return %c0_i32, %c0_i32_0 : i32, i32
  }
  func.func @transform_3(%arg0: i32, %arg1: i32) -> (i32, i32, i32) {
    %c0_i32 = arith.constant 0 : i32
    %c0_i32_0 = arith.constant 0 : i32
    return %arg0, %arg1, %c0_i32 : i32, i32, i32
  }
}

</mosaic_0001>

<bundles_post_ra>
// kernel: tpu_custom_call.1
= control target key start
LH: loop header
LB: loop body
LE: loop exit
PB: predicated region body
PF: predicated region fallthrough
CT: control target
= control target key end

     0   :  { %s1100_s12 = smov 0   ;;  %s1102_s13 = smov 0   ;;  %s1283_s0 = inlined_call_operand.vmem [shape: bf16[4,256,27], index: 0, kind: input, shape index: {}]   ;;  %s1284_s1 = inlined_call_operand.vmem [shape: bf16[27,64], index: 1, kind: input, shape index: {}]   ;;  %s1285_s2 = inlined_call_operand.vmem [shape: f32[1,64], index: 2, kind: input, shape index: {}]   ;;  %s1286_s3 = inlined_call_operand.vmem [shape: bf16[4,256,64], index: 3, kind: output, shape index: {}]  }
   0x1   :  { %s1104_s14 = smov 0  }
   0x2 LB: > { %s25_s15 = sadd.s32 1, %s1073_s13  ;;  %p846_p0 = scmp.ge.s32.totalorder %s1077_s14, 1  ;;  %s1077_s14 = sphi %s1104_s14, %s13_s14   ;;  %s1073_s13 = sphi %s1102_s13, %s1288_s13   ;;  %s1069_s12 = sphi %s1100_s12, %s1287_s12  }
   0x3   : > { %p27_p1 = scmp.ge.s32.totalorder %s25_s15, 4  ;;  %p158_p2 = scmp.lt.s32.totalorder %s1077_s14, 5 }
   0x5   : > { %s1290_s15 = smov (%p27_p1, %s25_s15), 0  ;;  %p159_p3 = pnand %p846_p0, %p158_p2 }
   0x6   : > { %v1037_v0 = vld [vmem:[%s1284_s1] sm:$0xff] (!%p159_p3)   ;;  %vm394_vm0 = vcmask (!%p159_p3), 1044480   ;;  %v1038_v1 = vld [vmem:[%s1284_s1 + $0x8] sm:$0x3f] (!%p159_p3)   ;;  %vm395_vm1 = vcmask (!%p159_p3), 1045504   ;;  %p191_p4 = scmp.lt.s32.totalorder (!%p159_p3), %s1069_s12, 3 }
   0x7   : > { %162 = sbr.rel (%p159_p3) target bundleno = 266 (0x10a), region = 32  ;;  %972 = vmatprep.subr.bf16.mxu0 (!%p159_p3), %v1037_v0  ;;  %1008 = vmatprep.subr.bf16.mxu1 (!%p159_p3), %v1037_v0  ;;  %v1079_v2 = vmov (!%p159_p3), 65535   ;;  %vm345_vm2 = vcmask (!%p159_p3), 220160   ;;  %v1169_v22 = vld [vmem:[%s1285_s2] ss:$0 sm:$0xff] (!%p159_p3)  ;;  %vm722_vm3 = vcmask (!%p159_p3), 519168  }
   0x8   : > { %973 = vmatpush3.bf16.msra.mxu0 (!%p159_p3), %v1037_v0  ;;  %1010 = vmatpush3.bf16.msra.mxu1 (!%p159_p3), %v1037_v0  ;;  %v396_v3 = vsel (!%p159_p3), %vm394_vm0, 4294967295, %v1079_v2 }
   0x9   : > { %v397_v4 = vsel (!%p159_p3), %vm395_vm1, %v396_v3, 0 }
   0xa   : > { %v399_v5 = vand.u32 (!%p159_p3), %v1038_v1, %v397_v4 }
   0xc   : > { %974 = vmatprep.subr.bf16.mxu0 (!%p159_p3), %v399_v5  ;;  %1009 = vmatprep.subr.bf16.mxu1 (!%p159_p3), %v399_v5 }
   0xd   : > { %975 = vmatpush3.bf16.msra.mxu0 (!%p159_p3), %v399_v5  ;;  %1011 = vmatpush3.bf16.msra.mxu1 (!%p159_p3), %v399_v5 }
   0xe   : > { %s1292_s12 = smov (!%p191_p4, %s1069_s12), 3 }
   0xf   : > { %s920_s20 = sshll.u32 %s1292_s12, 7 }
  0x10   : > { %s1132_s23 = scalar_lea.vmem %s1283_s0, %s920_s20  ;;  %s1181_s28 = scalar_lea.vmem %s1286_s3, %s920_s20 }
  0x11   : > { %v1039_v6 = vld [vmem:[%s1132_s23] sm:$0xff]   ;;  %v1041_v8 = vld [vmem:[%s1132_s23 + $0x8] sm:$0xff]   ;;  %v1043_v10 = vld [vmem:[%s1132_s23 + $0x10] sm:$0xff]  }
  0x12   : > { %v1040_v7 = vld [vmem:[%s1132_s23 + $0x40] sm:$0xff]   ;;  %976 = vmatprep.mubr.msk.bf16.mxu0 %vm345_vm2, %v1039_v6  ;;  %v1042_v9 = vld [vmem:[%s1132_s23 + $0x48] sm:$0xff]   ;;  %v1044_v11 = vld [vmem:[%s1132_s23 + $0x50] sm:$0xff]  }
  0x13   : > { %992 = vmatprep.mubr.msk.bf16.mxu1 %vm345_vm2, %v1040_v7  ;;  %977 = vmatmul.mubr.msk.bf16.vlgmr.msra.gmra.mrb[0].mxu0 %vm345_vm2, %v1041_v8  ;;  %v1045_v12 = vld [vmem:[%s1132_s23 + $0x18] sm:$0xff]   ;;  %v1047_v14 = vld [vmem:[%s1132_s23 + $0x20] sm:$0xff]   ;;  %v1049_v16 = vld [vmem:[%s1132_s23 + $0x28] sm:$0xff]  }
  0x14   : > { %993 = vmatmul.mubr.msk.bf16.vlgmr.msra.gmra.mrb[0].mxu1 %vm345_vm2, %v1042_v9  ;;  %980 = vmatprep.mubr.msk.bf16.mxu0 %vm345_vm2, %v1043_v10  ;;  %v1046_v13 = vld [vmem:[%s1132_s23 + $0x58] sm:$0xff]   ;;  %v1048_v15 = vld [vmem:[%s1132_s23 + $0x60] sm:$0xff]   ;;  %v1050_v17 = vld [vmem:[%s1132_s23 + $0x68] sm:$0xff]  }
  0x15   : > { %996 = vmatprep.mubr.msk.bf16.mxu1 %vm345_vm2, %v1044_v11  ;;  %v1051_v18 = vld [vmem:[%s1132_s23 + $0x30] sm:$0xff]   ;;  %v1053_v20 = vld [vmem:[%s1132_s23 + $0x38] sm:$0xff]  }
  0x16   : > { %v1052_v19 = vld [vmem:[%s1132_s23 + $0x70] sm:$0xff]   ;;  %v1054_v21 = vld [vmem:[%s1132_s23 + $0x78] sm:$0xff]  }
  0x1b   : > { %981 = vmatmul.mubr.msk.bf16.gmra.mrb[4].mxu0 %vm345_vm2, %v1045_v12 }
  0x1c   : > { %997 = vmatmul.mubr.msk.bf16.gmra.mrb[4].mxu1 %vm345_vm2, %v1046_v13  ;;  %984 = vmatprep.mubr.msk.bf16.mxu0 %vm345_vm2, %v1047_v14 }
  0x1d   : > { %1000 = vmatprep.mubr.msk.bf16.mxu1 %vm345_vm2, %v1048_v15 }
  0x23   : > { %985 = vmatmul.mubr.msk.bf16.gmra.mrb[8].mxu0 %vm345_vm2, %v1049_v16 }
  0x24   : > { %1001 = vmatmul.mubr.msk.bf16.gmra.mrb[8].mxu1 %vm345_vm2, %v1050_v17  ;;  %988 = vmatprep.mubr.msk.bf16.mxu0 %vm345_vm2, %v1051_v18 }
  0x25   : > { %1004 = vmatprep.mubr.msk.bf16.mxu1 %vm345_vm2, %v1052_v19 }
  0x2b   : > { %989 = vmatmul.mubr.msk.bf16.gmra.mrb[12].mxu0 %vm345_vm2, %v1053_v20 }
  0x2c   : > { %1005 = vmatmul.mubr.msk.bf16.gmra.mrb[12].mxu1 %vm345_vm2, %v1054_v21 }
  0xe6   : > { %v978_v23 = vpop.f32.mrb[0].mxu0 }
  0xe7   : > { %v444_v24 = vadd.f32 %v978_v23, %v1169_v22  ;;  %v994_v25 = vpop.f32.mrb[0].mxu1  ;;  %v435_v26 = vpop.f32.mrb[1].mxu0 }
  0xe8   : > { %v508_v27 = vadd.f32 %v994_v25, %v1169_v22  ;;  %v436_v28 = vadd.f32 %v1169_v22, %v435_v26  ;;  %v499_v29 = vpop.f32.mrb[1].mxu1  ;;  %v979_v30 = vpop.f32.mrb[2].mxu0 }
  0xe9   : > { %v564_v31 = vmax.f32 %v444_v24, 0.0  ;;  %v500_v32 = vadd.f32 %v1169_v22, %v499_v29  ;;  %v447_v33 = vadd.f32 %v979_v30, %v1169_v22  ;;  %v995_v34 = vpop.f32.mrb[2].mxu1  ;;  %v438_v35 = vpop.f32.mrb[3].mxu0 }
  0xea   : > { %v580_v36 = vmax.f32 %v508_v27, 0.0  ;;  %v562_v37 = vmax.f32 %v436_v28, 0.0  ;;  %v511_v38 = vadd.f32 %v995_v34, %v1169_v22  ;;  %v439_v39 = vadd.f32 %v1169_v22, %v438_v35  ;;  %v502_v40 = vpop.f32.mrb[3].mxu1 }
  0xeb   : > { %v924_v41 = vpack.c.bf16 %v564_v31, %v564_v31  ;;  %v578_v42 = vmax.f32 %v500_v32, 0.0  ;;  %v565_v43 = vmax.f32 %v447_v33, 0.0  ;;  %v503_v44 = vadd.f32 %v1169_v22, %v502_v40 }
  0xec   : > { %v940_v45 = vpack.c.bf16 %v580_v36, %v580_v36  ;;  %v922_v46 = vpack.c.bf16 %v562_v37, %v562_v37  ;;  %v581_v47 = vmax.f32 %v511_v38, 0.0  ;;  %v563_v48 = vmax.f32 %v439_v39, 0.0 }
  0xed   : > { %725 = vst.msk [vmem:[%s1181_s28 + $0x8] sm:$0xf] %vm722_vm3, %v924_v41  ;;  %v938_v49 = vpack.c.bf16 %v578_v42, %v578_v42  ;;  %v925_v50 = vpack.c.bf16 %v565_v43, %v565_v43  ;;  %v579_v51 = vmax.f32 %v503_v44, 0.0 }
  0xee   : > { %741 = vst.msk [vmem:[%s1181_s28 + $0x48] sm:$0xf] %vm722_vm3, %v940_v45  ;;  %723 = vst.msk [vmem:[%s1181_s28] sm:$0xf] %vm722_vm3, %v922_v46  ;;  %v941_v52 = vpack.c.bf16 %v581_v47, %v581_v47  ;;  %v923_v53 = vpack.c.bf16 %v563_v48, %v563_v48  ;;  %v982_v54 = vpop.f32.mrb[4].mxu0 }
  0xef   : > { %739 = vst.msk [vmem:[%s1181_s28 + $0x40] sm:$0xf] %vm722_vm3, %v938_v49  ;;  %726 = vst.msk [vmem:[%s1181_s28 + $0xc] sm:$0xf] %vm722_vm3, %v925_v50  ;;  %v939_v55 = vpack.c.bf16 %v579_v51, %v579_v51  ;;  %v460_v56 = vadd.f32 %v982_v54, %v1169_v22  ;;  %v998_v57 = vpop.f32.mrb[4].mxu1  ;;  %v451_v58 = vpop.f32.mrb[5].mxu0 }
  0xf0   : > { %742 = vst.msk [vmem:[%s1181_s28 + $0x4c] sm:$0xf] %vm722_vm3, %v941_v52  ;;  %724 = vst.msk [vmem:[%s1181_s28 + $0x4] sm:$0xf] %vm722_vm3, %v923_v53  ;;  %v524_v59 = vadd.f32 %v998_v57, %v1169_v22  ;;  %v452_v60 = vadd.f32 %v1169_v22, %v451_v58  ;;  %v515_v61 = vpop.f32.mrb[5].mxu1  ;;  %v983_v62 = vpop.f32.mrb[6].mxu0 }
  0xf1   : > { %740 = vst.msk [vmem:[%s1181_s28 + $0x44] sm:$0xf] %vm722_vm3, %v939_v55  ;;  %v568_v63 = vmax.f32 %v460_v56, 0.0  ;;  %v516_v0 = vadd.f32 %v1169_v22, %v515_v61  ;;  %v463_v1 = vadd.f32 %v983_v62, %v1169_v22  ;;  %v999_v2 = vpop.f32.mrb[6].mxu1  ;;  %v454_v3 = vpop.f32.mrb[7].mxu0 }
  0xf2   : > { %v584_v4 = vmax.f32 %v524_v59, 0.0  ;;  %v566_v5 = vmax.f32 %v452_v60, 0.0  ;;  %v527_v6 = vadd.f32 %v999_v2, %v1169_v22  ;;  %v455_v7 = vadd.f32 %v1169_v22, %v454_v3  ;;  %v518_v8 = vpop.f32.mrb[7].mxu1 }
  0xf3   : > { %v928_v9 = vpack.c.bf16 %v568_v63, %v568_v63  ;;  %v582_v10 = vmax.f32 %v516_v0, 0.0  ;;  %v569_v11 = vmax.f32 %v463_v1, 0.0  ;;  %v519_v12 = vadd.f32 %v1169_v22, %v518_v8 }
  0xf4   : > { %v944_v13 = vpack.c.bf16 %v584_v4, %v584_v4  ;;  %v926_v14 = vpack.c.bf16 %v566_v5, %v566_v5  ;;  %v585_v15 = vmax.f32 %v527_v6, 0.0  ;;  %v567_v16 = vmax.f32 %v455_v7, 0.0 }
  0xf5   : > { %729 = vst.msk [vmem:[%s1181_s28 + $0x18] sm:$0xf] %vm722_vm3, %v928_v9  ;;  %v942_v17 = vpack.c.bf16 %v582_v10, %v582_v10  ;;  %v929_v18 = vpack.c.bf16 %v569_v11, %v569_v11  ;;  %v583_v19 = vmax.f32 %v519_v12, 0.0 }
  0xf6   : > { %745 = vst.msk [vmem:[%s1181_s28 + $0x58] sm:$0xf] %vm722_vm3, %v944_v13  ;;  %727 = vst.msk [vmem:[%s1181_s28 + $0x10] sm:$0xf] %vm722_vm3, %v926_v14  ;;  %v945_v20 = vpack.c.bf16 %v585_v15, %v585_v15  ;;  %v927_v21 = vpack.c.bf16 %v567_v16, %v567_v16  ;;  %v986_v23 = vpop.f32.mrb[8].mxu0 }
  0xf7   : > { %743 = vst.msk [vmem:[%s1181_s28 + $0x50] sm:$0xf] %vm722_vm3, %v942_v17  ;;  %730 = vst.msk [vmem:[%s1181_s28 + $0x1c] sm:$0xf] %vm722_vm3, %v929_v18  ;;  %v943_v24 = vpack.c.bf16 %v583_v19, %v583_v19  ;;  %v476_v25 = vadd.f32 %v986_v23, %v1169_v22  ;;  %v1002_v26 = vpop.f32.mrb[8].mxu1  ;;  %v467_v27 = vpop.f32.mrb[9].mxu0 }
  0xf8   : > { %746 = vst.msk [vmem:[%s1181_s28 + $0x5c] sm:$0xf] %vm722_vm3, %v945_v20  ;;  %728 = vst.msk [vmem:[%s1181_s28 + $0x14] sm:$0xf] %vm722_vm3, %v927_v21  ;;  %v540_v28 = vadd.f32 %v1002_v26, %v1169_v22  ;;  %v468_v29 = vadd.f32 %v1169_v22, %v467_v27  ;;  %v531_v30 = vpop.f32.mrb[9].mxu1  ;;  %v987_v31 = vpop.f32.mrb[10].mxu0 }
  0xf9   : > { %744 = vst.msk [vmem:[%s1181_s28 + $0x54] sm:$0xf] %vm722_vm3, %v943_v24  ;;  %v572_v32 = vmax.f32 %v476_v25, 0.0  ;;  %v532_v33 = vadd.f32 %v1169_v22, %v531_v30  ;;  %v479_v34 = vadd.f32 %v987_v31, %v1169_v22  ;;  %v1003_v35 = vpop.f32.mrb[10].mxu1  ;;  %v470_v36 = vpop.f32.mrb[11].mxu0 }
  0xfa   : > { %v588_v37 = vmax.f32 %v540_v28, 0.0  ;;  %v570_v38 = vmax.f32 %v468_v29, 0.0  ;;  %v543_v39 = vadd.f32 %v1003_v35, %v1169_v22  ;;  %v471_v40 = vadd.f32 %v1169_v22, %v470_v36  ;;  %v534_v41 = vpop.f32.mrb[11].mxu1 }
  0xfb   : > { %v932_v42 = vpack.c.bf16 %v572_v32, %v572_v32  ;;  %v586_v43 = vmax.f32 %v532_v33, 0.0  ;;  %v573_v44 = vmax.f32 %v479_v34, 0.0  ;;  %v535_v45 = vadd.f32 %v1169_v22, %v534_v41 }
  0xfc   : > { %v948_v46 = vpack.c.bf16 %v588_v37, %v588_v37  ;;  %v930_v47 = vpack.c.bf16 %v570_v38, %v570_v38  ;;  %v589_v48 = vmax.f32 %v543_v39, 0.0  ;;  %v571_v49 = vmax.f32 %v471_v40, 0.0 }
  0xfd   : > { %733 = vst.msk [vmem:[%s1181_s28 + $0x28] sm:$0xf] %vm722_vm3, %v932_v42  ;;  %v946_v50 = vpack.c.bf16 %v586_v43, %v586_v43  ;;  %v933_v51 = vpack.c.bf16 %v573_v44, %v573_v44  ;;  %v587_v52 = vmax.f32 %v535_v45, 0.0 }
  0xfe   : > { %749 = vst.msk [vmem:[%s1181_s28 + $0x68] sm:$0xf] %vm722_vm3, %v948_v46  ;;  %731 = vst.msk [vmem:[%s1181_s28 + $0x20] sm:$0xf] %vm722_vm3, %v930_v47  ;;  %v949_v53 = vpack.c.bf16 %v589_v48, %v589_v48  ;;  %v931_v54 = vpack.c.bf16 %v571_v49, %v571_v49  ;;  %v990_v55 = vpop.f32.mrb[12].mxu0 }
  0xff   : > { %747 = vst.msk [vmem:[%s1181_s28 + $0x60] sm:$0xf] %vm722_vm3, %v946_v50  ;;  %734 = vst.msk [vmem:[%s1181_s28 + $0x2c] sm:$0xf] %vm722_vm3, %v933_v51  ;;  %v947_v56 = vpack.c.bf16 %v587_v52, %v587_v52  ;;  %v492_v57 = vadd.f32 %v990_v55, %v1169_v22  ;;  %v1006_v58 = vpop.f32.mrb[12].mxu1  ;;  %v483_v59 = vpop.f32.mrb[13].mxu0 }
 0x100   : > { %750 = vst.msk [vmem:[%s1181_s28 + $0x6c] sm:$0xf] %vm722_vm3, %v949_v53  ;;  %732 = vst.msk [vmem:[%s1181_s28 + $0x24] sm:$0xf] %vm722_vm3, %v931_v54  ;;  %v556_v60 = vadd.f32 %v1006_v58, %v1169_v22  ;;  %v484_v61 = vadd.f32 %v1169_v22, %v483_v59  ;;  %v547_v62 = vpop.f32.mrb[13].mxu1  ;;  %v991_v63 = vpop.f32.mrb[14].mxu0 }
 0x101   : > { %748 = vst.msk [vmem:[%s1181_s28 + $0x64] sm:$0xf] %vm722_vm3, %v947_v56  ;;  %v576_v0 = vmax.f32 %v492_v57, 0.0  ;;  %v548_v1 = vadd.f32 %v1169_v22, %v547_v62  ;;  %v495_v2 = vadd.f32 %v991_v63, %v1169_v22  ;;  %v1007_v3 = vpop.f32.mrb[14].mxu1  ;;  %v486_v4 = vpop.f32.mrb[15].mxu0 }
 0x102   : > { %v592_v5 = vmax.f32 %v556_v60, 0.0  ;;  %v574_v6 = vmax.f32 %v484_v61, 0.0  ;;  %v559_v7 = vadd.f32 %v1007_v3, %v1169_v22  ;;  %v487_v8 = vadd.f32 %v1169_v22, %v486_v4  ;;  %v550_v9 = vpop.f32.mrb[15].mxu1 }
 0x103   : > { %v936_v10 = vpack.c.bf16 %v576_v0, %v576_v0  ;;  %v590_v11 = vmax.f32 %v548_v1, 0.0  ;;  %v577_v12 = vmax.f32 %v495_v2, 0.0  ;;  %v551_v13 = vadd.f32 %v1169_v22, %v550_v9 }
 0x104   : > { %v952_v14 = vpack.c.bf16 %v592_v5, %v592_v5  ;;  %v934_v15 = vpack.c.bf16 %v574_v6, %v574_v6  ;;  %v593_v16 = vmax.f32 %v559_v7, 0.0  ;;  %v575_v17 = vmax.f32 %v487_v8, 0.0 }
 0x105   : > { %737 = vst.msk [vmem:[%s1181_s28 + $0x38] sm:$0xf] %vm722_vm3, %v936_v10  ;;  %v950_v18 = vpack.c.bf16 %v590_v11, %v590_v11  ;;  %v937_v19 = vpack.c.bf16 %v577_v12, %v577_v12  ;;  %v591_v20 = vmax.f32 %v551_v13, 0.0 }
 0x106   : > { %753 = vst.msk [vmem:[%s1181_s28 + $0x78] sm:$0xf] %vm722_vm3, %v952_v14  ;;  %735 = vst.msk [vmem:[%s1181_s28 + $0x30] sm:$0xf] %vm722_vm3, %v934_v15  ;;  %v953_v21 = vpack.c.bf16 %v593_v16, %v593_v16  ;;  %v935_v23 = vpack.c.bf16 %v575_v17, %v575_v17 }
 0x107   : > { %751 = vst.msk [vmem:[%s1181_s28 + $0x70] sm:$0xf] %vm722_vm3, %v950_v18  ;;  %738 = vst.msk [vmem:[%s1181_s28 + $0x3c] sm:$0xf] %vm722_vm3, %v937_v19  ;;  %v951_v22 = vpack.c.bf16 %v591_v20, %v591_v20 }
 0x108   : > { %754 = vst.msk [vmem:[%s1181_s28 + $0x7c] sm:$0xf] %vm722_vm3, %v953_v21  ;;  %736 = vst.msk [vmem:[%s1181_s28 + $0x34] sm:$0xf] %vm722_vm3, %v935_v23 }
 0x109   : > { %752 = vst.msk [vmem:[%s1181_s28 + $0x74] sm:$0xf] %vm722_vm3, %v951_v22 }
 0x10a PF: > { %s13_s14 = sadd.s32 1, %s1077_s14   ;;  %s1287_s12 = smov %s1073_s13 }
 0x10b   : > { %p10_p5 = scmp.ge.s32.totalorder %s13_s14, 6   ;;  %s1288_s13 = smov %s1290_s15 }
 0x10d   :  { %12 = sbr.rel (!%p10_p5) target bundleno = 2 (0x2), region = 62 }

</bundles_post_ra>
